<compile_context>
chip_gen: v6e
topology: v6e:2x2x1
jax: 0.10.0
libtpu: 0.0.40
codegen_flags: <defaults>
</compile_context>

<pallas_src>
import jax
import jax.numpy as jnp
from jax.experimental import pallas as pl
from jax.experimental.pallas import tpu as pltpu

MAX_BLOCK_ROWS = 512          # 512 x 1024 f32 = 2 MiB per block
LANE_CANDIDATES = (1024, 512, 256, 128)


def _make_fake_quant_kernel(w_min, w_max, inv_scale, scale):
    """Build the elementwise kernel with the quantization constants baked in."""
    w_min = float(w_min)
    w_max = float(w_max)
    inv_scale = float(inv_scale)
    scale = float(scale)

    def kernel(x_ref, o_ref):
        x = x_ref[...].astype(jnp.float32)
        x_clamped = jnp.clip(x, w_min, w_max)
        quant_idx = jnp.round((x_clamped - w_min) * inv_scale)
        o_ref[...] = (quant_idx * scale + w_min).astype(o_ref.dtype)

    return kernel


def fake_quantize(x, bits, w_min=0.001, w_max=1.0, quantize=True):
    """Pallas implementation of FakeQuantize.forward for an arbitrary-shaped tensor."""
    if w_min >= w_max:
        raise ValueError(f"w_min ({w_min}) must be < w_max ({w_max})")
    if bits <= 0:
        raise ValueError(f"bits must be positive, got {bits}")
    if quantize is False:
        return x

    levels = 2 ** bits
    # Host-side (double precision) constants; baked into the kernel at trace time.
    scale = (w_max - w_min) / (levels - 1)
    inv_scale = 1.0 / scale

    orig_shape = x.shape
    n = x.size

    # Pick a lane width that avoids any padding when possible.
    lanes = LANE_CANDIDATES[-1]
    for c in LANE_CANDIDATES:
        if n % c == 0:
            lanes = c
            break

    flat = x.reshape(-1)                      # native dtype, no f32 round-trip
    pad = (-n) % lanes
    if pad:
        flat = jnp.pad(flat, (0, pad))        # tail-only pad (< lanes elements)
    rows = flat.shape[0] // lanes
    x2d = flat.reshape(rows, lanes)

    # Block-row choice: big (>=512-row) lane-dense slabs for large tensors,
    # full-extent (or split-in-two) blocks for small ones.  Block rows must be
    # a multiple of 8 or equal the full row count.
    if rows > MAX_BLOCK_ROWS:
        block_rows = MAX_BLOCK_ROWS
    elif rows >= 16 and rows % 8 == 0:
        # at least 2 grid steps so v7x's two TensorCores both get work
        block_rows = max(8, ((rows // 2) // 8) * 8)
    else:
        block_rows = rows                     # full extent, single step

    grid = (pl.cdiv(rows, block_rows),)

    kernel = _make_fake_quant_kernel(w_min, w_max, inv_scale, scale)

    out2d = pl.pallas_call(
        kernel,
        out_shape=jax.ShapeDtypeStruct((rows, lanes), x.dtype),
        grid=grid,
        in_specs=[pl.BlockSpec((block_rows, lanes), lambda i: (i, 0))],
        out_specs=pl.BlockSpec((block_rows, lanes), lambda i: (i, 0)),
        compiler_params=pltpu.CompilerParams(
            dimension_semantics=("parallel",),
        ),
    )(x2d)

    if pad:
        out = out2d.reshape(-1)[:n].reshape(orig_shape)
    else:
        out = out2d.reshape(orig_shape)
    return out


def fake_quantize_ref(x, bits, w_min=0.001, w_max=1.0):
    """Plain-JAX reference (mirrors the PyTorch forward)."""
    levels = 2 ** bits
    scale = (w_max - w_min) / (levels - 1)
    xc = jnp.clip(x, w_min, w_max)
    qi = jnp.round((xc - w_min) / scale)
    return qi * scale + w_min


if __name__ == "__main__":
    key = jax.random.PRNGKey(0)
    # Small NCHW-like input consistent with a conv-weight / activation tensor.
    x = jax.random.uniform(key, (2, 4, 16, 16), dtype=jnp.float32,
                           minval=-0.5, maxval=1.5)

    bits = 4
    out = fake_quantize(x, bits=bits, w_min=0.001, w_max=1.0, quantize=True)
    out = jax.block_until_ready(out)

    ref = fake_quantize_ref(x, bits=bits, w_min=0.001, w_max=1.0)
    assert out.shape == x.shape and out.dtype == x.dtype
    assert jnp.allclose(out, ref, atol=1e-6), "mismatch vs reference"

    # quantize=False path returns the input untouched.
    passthrough = fake_quantize(x, bits=bits, quantize=False)
    assert jnp.array_equal(passthrough, x)

    print("KERNEL_OK")
</pallas_src>

<mosaic_0001>
module attributes {stable_mosaic.version = 11 : i64} {
  func.func @kernel(%arg0: i32, %arg1: memref<2x1024xf32, #tpu.memory_space<vmem>>, %arg2: memref<2x1024xf32, #tpu.memory_space<vmem>>) attributes {dimension_semantics = [#tpu.dimension_semantics<parallel>], iteration_bounds = array<i64: 1>, scalar_prefetch = 0 : i64, scratch_operands = 0 : i64, tpu.core_type = #tpu.core_type<tc>, window_params = [{transform_indices = @transform_0, window_bounds = array<i64: 2, 1024>}, {transform_indices = @transform_1, window_bounds = array<i64: 2, 1024>}]} {
    %c0 = arith.constant 0 : index
    %c0_0 = arith.constant 0 : index
    %0 = vector.load %arg1[%c0, %c0_0] : memref<2x1024xf32, #tpu.memory_space<vmem>>, vector<2x1024xf32>
    %cst = arith.constant 1.000000e-03 : f32
    %cst_1 = arith.constant 1.000000e+00 : f32
    %1 = vector.broadcast %cst : f32 to vector<2x1024xf32>
    %2 = arith.maximumf %1, %0 : vector<2x1024xf32>
    %3 = vector.broadcast %cst_1 : f32 to vector<2x1024xf32>
    %4 = arith.minimumf %3, %2 : vector<2x1024xf32>
    %cst_2 = arith.constant 1.000000e-03 : f32
    %5 = vector.broadcast %cst_2 : f32 to vector<2x1024xf32>
    %6 = arith.subf %4, %5 : vector<2x1024xf32>
    %cst_3 = arith.constant 15.0150146 : f32
    %7 = vector.broadcast %cst_3 : f32 to vector<2x1024xf32>
    %8 = arith.mulf %6, %7 : vector<2x1024xf32>
    %9 = math.roundeven %8 : vector<2x1024xf32>
    %cst_4 = arith.constant 6.660000e-02 : f32
    %10 = vector.broadcast %cst_4 : f32 to vector<2x1024xf32>
    %11 = arith.mulf %9, %10 : vector<2x1024xf32>
    %cst_5 = arith.constant 1.000000e-03 : f32
    %12 = vector.broadcast %cst_5 : f32 to vector<2x1024xf32>
    %13 = arith.addf %11, %12 : vector<2x1024xf32>
    %c0_6 = arith.constant 0 : index
    %c0_7 = arith.constant 0 : index
    %14 = vector.load %arg2[%c0_6, %c0_7] : memref<2x1024xf32, #tpu.memory_space<vmem>>, vector<2x1024xf32>
    tpu.vector_store %arg2[%c0_6, %c0_7], %13 {strides = array<i32>} : memref<2x1024xf32, #tpu.memory_space<vmem>>, vector<2x1024xf32>,
    return
  }
  func.func @transform_0(%arg0: i32) -> (i32, i32) {
    %c0_i32 = arith.constant 0 : i32
    %c0_i32_0 = arith.constant 0 : i32
    return %arg0, %c0_i32 : i32, i32
  }
  func.func @transform_1(%arg0: i32) -> (i32, i32) {
    %c0_i32 = arith.constant 0 : i32
    %c0_i32_0 = arith.constant 0 : i32
    return %arg0, %c0_i32 : i32, i32
  }
}

</mosaic_0001>

<bundles_post_ra>
// kernel: tpu_custom_call.1
= control target key start
LH: loop header
LB: loop body
LE: loop exit
PB: predicated region body
PF: predicated region fallthrough
CT: control target
= control target key end

     0   :  { %6 = vsyncpa [#allocation3], 0  ;;  %s136_s0 = inlined_call_operand.hbm [shape: f32[2,1024], index: 0, kind: input, shape index: {}]   ;;  %s137_s1 = inlined_call_operand.hbm [shape: f32[2,1024], index: 1, kind: output, shape index: {}]  }
   0x1   :  { %7 = vsyncpa [#allocation4], 0  ;;  %s118_s6 = smov [#allocation2]  }
   0x2   :  { %s14_s7 = sshll.u32 %s118_s6, 4  ;;  %s15_s7 = int_to_ptr.vmem [resolvable:$true] %s14_s7 }
   0x3   :  { %s82_s8 = scalar_lea.vmem %s15_s7, 256  ;;  %p87_p1 = scmp.lt.s32.totalorder %s15_s7, %s15_s7 }
   0x4   :  { %p83_p0 = scmp.ne.s32.totalorder %s15_s7, %s82_s8  ;;  %p88_p2 = scmp.lt.s32.totalorder %s82_s8, %s82_s8 }
   0x6   :  { %p89_p3 = por %p88_p2, %p87_p1 }
   0x8   :  { %p90_p4 = pnand %p89_p3, %p83_p0 }
   0xa   :  { %93 = shalt.err (!%p90_p4)
}
   0xb   :  { %17 = dma.hbm_to_vmem [thread:$0]  %s136_s0, 256, %s15_s7, [#allocation3]  }
   0xc   :  { %114 = dma.done.wait [#allocation3], 256  }
   0xd   :  { %115 = vsyncadd [#allocation3], 4294967040  ;;  %v21_v0 = vld [vmem:[#allocation2] sm:$0xff]  ;;  %v22_v1 = vld [vmem:[#allocation2 + $0x8] sm:$0xff]  ;;  %s119_s0 = smov [#allocation5]  }
   0xe   :  { %v23_v2 = vmax.f32 %v21_v0, 0.001  ;;  %v24_v3 = vmax.f32 %v22_v1, 0.001  ;;  %s45_s11 = sshll.u32 %s119_s0, 4  ;;  %s46_s11 = int_to_ptr.vmem [resolvable:$true] %s45_s11 }
   0xf   :  { %s94_s12 = scalar_lea.vmem %s46_s11, 256  ;;  %p99_p6 = scmp.lt.s32.totalorder %s46_s11, %s46_s11 }
  0x10   :  { %v25_v4 = vmin.f32 %v23_v2, 1.0  ;;  %v26_v5 = vmin.f32 %v24_v3, 1.0  ;;  %p95_p5 = scmp.ne.s32.totalorder %s46_s11, %s94_s12  ;;  %p100_p7 = scmp.lt.s32.totalorder %s94_s12, %s94_s12 }
  0x12   :  { %v54_v6 = vadd.f32 -0.001, %v25_v4  ;;  %v55_v7 = vadd.f32 -0.001, %v26_v5  ;;  %p101_p8 = por %p100_p7, %p99_p6 }
  0x14   :  { %v29_v8 = vmul.f32 15.015015, %v54_v6  ;;  %v30_v9 = vmul.f32 15.015015, %v55_v7  ;;  %p102_p9 = pnand %p101_p8, %p95_p5 }
  0x16   :  { %v58_v10 = vcvt.f32.s32 %v29_v8  ;;  %v56_v11 = vand.u32 2147483647, %v29_v8  ;;  %v66_v12 = vcvt.f32.s32 %v30_v9  ;;  %v61_v14 = vand.u32 2147483648, %v29_v8 }
  0x17   :  { %v64_v15 = vand.u32 2147483647, %v30_v9  ;;  %v69_v17 = vand.u32 2147483648, %v30_v9 }
  0x18   :  { %v59_v13 = vcvt.s32.f32 %v58_v10  ;;  %v67_v16 = vcvt.s32.f32 %v66_v12  ;;  %vm57_vm0 = vcmp.lt.f32.partialorder %v56_v11, 8388608.0 }
  0x19   :  { %vm65_vm1 = vcmp.lt.f32.partialorder %v64_v15, 8388608.0 }
  0x1a   :  { %v60_v18 = vand.u32 2147483647, %v59_v13  ;;  %v68_v19 = vand.u32 2147483647, %v67_v16 }
  0x1c   :  { %v62_v20 = vor.u32 %v61_v14, %v60_v18  ;;  %v70_v21 = vor.u32 %v69_v17, %v68_v19 }
  0x1e   :  { %v63_v22 = vsel %vm57_vm0, %v62_v20, %v29_v8  ;;  %v71_v24 = vsel %vm65_vm1, %v70_v21, %v30_v9 }
  0x1f   :  { %v33_v23 = vmul.f32 0.0666, %v63_v22  ;;  %v34_v25 = vmul.f32 0.0666, %v71_v24 }
  0x21   :  { %v35_v26 = vadd.f32 0.001, %v33_v23  ;;  %v36_v27 = vadd.f32 0.001, %v34_v25 }
  0x23   :  { %37 = vst [vmem:[#allocation5] sm:$0xff] %v35_v26  ;;  %38 = vst [vmem:[#allocation5 + $0x8] sm:$0xff] %v36_v27 }
  0x24   :  { %105 = shalt.err (!%p102_p9)
}
  0x25   :  { %48 = dma.vmem_to_hbm [thread:$0]  %s46_s11, 256, %s137_s1, [#allocation4]  }
  0x26   :  { %116 = dma.done.wait [#allocation4], 256  }
  0x27   :  { %117 = vsyncadd [#allocation4], 4294967040 }
  0x28   :  { %52 = vsyncpa [#allocation3], 1 }
  0x29   :  { %53 = vsyncpa [#allocation4], 1 }

</bundles_post_ra>
